<compile_context>
chip_gen: v5e
topology: v5e:2x2
jax: 0.10.0
libtpu: 0.0.40
codegen_flags: <defaults>
</compile_context>

<pallas_src>
import functools

import jax
import jax.numpy as jnp
from jax.experimental import pallas as pl
from jax.experimental.pallas import tpu as pltpu


def _round_up(n, m):
    return ((n + m - 1) // m) * m


def _device_params():
    """Per-generation row tile and VMEM capacity, with safe fallbacks."""
    kind = ""
    try:
        kind = jax.devices()[0].device_kind.lower()
    except Exception:
        pass
    vmem_cap = None
    try:
        vmem_cap = int(pltpu.get_tpu_info().vmem_capacity_bytes)
    except Exception:
        vmem_cap = None
    is_v5e = ("v5" in kind) and (("lite" in kind) or ("v5e" in kind))
    is_v7 = "v7" in kind
    # v5e: 4x128^2 MXU + single vst slot -> 128-row tiles; v6e/v7x: 2x256^2 -> 256.
    row_tile = 128 if is_v5e else 256
    if vmem_cap is None:
        # v7x: 64 MiB per TensorCore; v5e/v6e: 128 MiB; unknown -> conservative.
        vmem_cap = (64 << 20) if (is_v7 or not kind) else (128 << 20)
    return row_tile, vmem_cap


def gcn_stack_kernel(xnz_ref, hwf_ref, w_ref, b_ref, out_ref, *,
                     n_layer, compute_dtype):
    """Runs one row-tile of sample nodes through the whole GCN stack in VMEM.

    xnz_ref : [tm, F]    binary feature mask rows (0/1), compute dtype
    hwf_ref : [L, F, E]  precomputed F_l @ W_l per layer (zero-padded), compute dtype
    w_ref   : [L, E, E]  per-layer GCN weights (zero-padded), compute dtype
    b_ref   : [L, 1, E]  per-layer biases (zero-padded), f32
    out_ref : [tm, E]    final sample-node embeddings
    """
    xb = xnz_ref[...].astype(jnp.float32)                 # exact 0/1 values
    deg = 1.0 + jnp.sum(xb, axis=1, keepdims=True)        # self loop + active features
    dinv = 1.0 / jnp.sqrt(deg)                            # GCN symmetric norm (dst side)
    dsq = 1.0 / deg                                       # self-loop term dinv^2
    xbn = (dinv * xb).astype(compute_dtype)               # fold dinv once, reuse all layers

    s = None                                              # sample-node state, starts at 0
    for l in range(n_layer):
        # dinv * (xb @ (F_l @ W_l))  -- feature chain already hoisted to the wrapper.
        agg = jnp.dot(xbn, hwf_ref[l], preferred_element_type=jnp.float32)
        if l == 0:
            s = agg + b_ref[l]                            # S_0 == 0 -> skip dead S@W matmul
        else:
            sw = jnp.dot(s.astype(compute_dtype), w_ref[l],
                         preferred_element_type=jnp.float32)
            s = dsq * sw + agg + b_ref[l]
    out_ref[...] = s.astype(out_ref.dtype)


def gnn_encoder_forward(x, emb_table, weights, biases, *,
                        edge_direction="unidirectional", drop_edge_p=0.0,
                        compute_dtype=jnp.bfloat16, out_dtype=None, row_tile=None):
    """JAX wrapper: builds the bipartite-graph glue and calls the Pallas kernel."""
    # TODO(synk): drop_edge is stochastic (uniform_() mask); drop_edge_p=0.0 keeps
    # every edge so the forward is deterministic.
    del drop_edge_p
    if edge_direction != "unidirectional":
        # TODO(synk): bidirectional / multipass_* couple feature rows back to sample
        # rows; not implemented in the bipartite-structured kernel.
        raise NotImplementedError(edge_direction)

    n_row, in_dim = x.shape
    emb_dim = emb_table.shape[1]
    n_layer = weights.shape[0]

    cdt = jnp.dtype(compute_dtype)
    out_dt = jnp.dtype(out_dtype) if out_dtype is not None else cdt

    gen_row_tile, vmem_cap = _device_params()
    if row_tile is None:
        row_tile = gen_row_tile

    # ---- lane/MXU-friendly padding (all pads are zeros -> math is exact) ----
    e_pad = _round_up(emb_dim, 128)
    f_pad = _round_up(in_dim, 128)

    # Row tile: keep it big, but guarantee >=2 grid steps when n_row allows so the
    # 'parallel' axis can be split across the 2 TensorCores on v7x megacore.
    n_row8 = _round_up(n_row, 8)
    if n_row8 <= _round_up(row_tile, 8):
        tm = _round_up(-(-n_row // 2), 8) if n_row8 > 8 else n_row8
    else:
        tm = _round_up(row_tile, 8)
    m_pad = _round_up(n_row, tm)
    grid = (m_pad // tm,)

    # ---- streamed operand: binary mask in the compute dtype (no f32 intermediate) ----
    # TODO(synk): for very large n_row stream this as int8 (halves HBM again); needs
    # 32-row tiles to respect int8 sublane packing.
    xnz = jnp.zeros((m_pad, f_pad), cdt).at[:n_row, :in_dim].set(
        (x != 0).astype(cdt))

    # ---- hoist the tile-invariant feature-node chain out of the grid (f32, exact) ----
    emb_f32 = emb_table.astype(jnp.float32)
    w_f32 = weights.astype(jnp.float32)
    b_f32 = biases.astype(jnp.float32)
    f = emb_f32
    hwf_layers = []
    for l in range(n_layer):
        h = jnp.matmul(f, w_f32[l], precision=jax.lax.Precision.HIGHEST)  # F_l @ W_l
        hwf_layers.append(h)
        f = h + b_f32[l][None, :]              # degree-1 feature rows: F_{l+1} = F_lW_l + b_l
    hwf = jnp.stack(hwf_layers, axis=0)        # [L, in_dim, emb_dim]

    hwf_p = jnp.zeros((n_layer, f_pad, e_pad), jnp.float32).at[
        :, :in_dim, :emb_dim].set(hwf).astype(cdt)
    w_p = jnp.zeros((n_layer, e_pad, e_pad), jnp.float32).at[
        :, :emb_dim, :emb_dim].set(w_f32).astype(cdt)
    b_p = jnp.zeros((n_layer, 1, e_pad), jnp.float32).at[:, 0, :emb_dim].set(b_f32)

    # ---- generation-aware VMEM budget ----
    cb = cdt.itemsize
    ob = out_dt.itemsize
    est = (2 * tm * f_pad * cb                       # streamed mask tile (double-buffered)
           + tm * f_pad * (4 + cb)                   # in-kernel xb(f32) + xbn temporaries
           + n_layer * f_pad * e_pad * cb            # hwf (constant index)
           + n_layer * e_pad * e_pad * cb            # W   (constant index)
           + n_layer * e_pad * 4                     # b
           + 2 * tm * e_pad * ob                     # out tile (double-buffered)
           + 3 * tm * e_pad * 4)                     # s / sw / agg f32 temporaries
    ceiling = max(vmem_cap - (16 << 20), 32 << 20)   # ~48 MiB on v7x, ~112 MiB on v5e/v6e
    vmem_limit = int(min(max(est + (16 << 20), 32 << 20), ceiling))

    kern = functools.partial(gcn_stack_kernel, n_layer=n_layer, compute_dtype=cdt)

    def _run(single_buffer_consts):
        const_kw = {"pipeline_mode": pl.Buffered(1)} if single_buffer_consts else {}
        grid_spec = pltpu.PrefetchScalarGridSpec(
            num_scalar_prefetch=0,
            grid=grid,
            in_specs=[
                pl.BlockSpec((tm, f_pad), lambda i: (i, 0)),                   # mask rows
                pl.BlockSpec((n_layer, f_pad, e_pad), lambda i: (0, 0, 0),
                             **const_kw),                                      # hwf
                pl.BlockSpec((n_layer, e_pad, e_pad), lambda i: (0, 0, 0),
                             **const_kw),                                      # W
                pl.BlockSpec((n_layer, 1, e_pad), lambda i: (0, 0, 0),
                             **const_kw),                                      # b
            ],
            out_specs=pl.BlockSpec((tm, e_pad), lambda i: (i, 0)),
        )
        return pl.pallas_call(
            kern,
            out_shape=jax.ShapeDtypeStruct((m_pad, e_pad), out_dt),
            grid_spec=grid_spec,
            compiler_params=pltpu.CompilerParams(
                dimension_semantics=("parallel",),
                vmem_limit_bytes=vmem_limit),
        )(xnz, hwf_p, w_p, b_p)

    try:
        out_full = _run(True)
    except Exception:
        # Older jax without pipeline_mode / Buffered(1): fall back to default buffering.
        out_full = _run(False)

    # sample-node rows only, un-padded -> exactly the module's `out[n_feature:]`
    return out_full[:n_row, :emb_dim]


def _reference_forward(x, emb_table, weights, biases):
    """Pure-JAX dense reference of the same GCN math (correctness check)."""
    n_row, in_dim = x.shape
    emb_dim = emb_table.shape[1]
    M = in_dim + n_row
    xb = (x != 0).astype(jnp.float32)
    A = jnp.zeros((M, M), jnp.float32).at[in_dim:, :in_dim].set(xb)
    a_hat = A + jnp.eye(M, dtype=jnp.float32)
    deg = a_hat.sum(axis=1, keepdims=True)
    dinv = 1.0 / jnp.sqrt(deg)
    h = jnp.concatenate([emb_table.astype(jnp.float32),
                         jnp.zeros((n_row, emb_dim), jnp.float32)], 0)
    for l in range(weights.shape[0]):
        h = dinv * (a_hat @ (dinv * (h @ weights[l]))) + biases[l][None, :]
    return h[in_dim:]


if __name__ == "__main__":
    key = jax.random.PRNGKey(0)
    n_row, in_dim, emb_dim, n_layer = 8, 16, 32, 2
    k1, k2, k3, k4 = jax.random.split(key, 4)

    # one-hot-ish binary input: each row activates a few features
    x = (jax.random.uniform(k1, (n_row, in_dim)) < 0.3).astype(jnp.int32)

    # nn.Embedding(in_dim, emb_dim) init ~ N(0, 1)
    emb_table = jax.random.normal(k2, (in_dim, emb_dim), jnp.float32)
    # GCNConv linear weights (glorot-scaled); nonzero biases to exercise the bias path
    weights = jax.random.normal(k3, (n_layer, emb_dim, emb_dim), jnp.float32) * (
        1.0 / jnp.sqrt(emb_dim))
    biases = 0.1 * jax.random.normal(k4, (n_layer, emb_dim), jnp.float32)

    ref = _reference_forward(x, emb_table, weights, biases)

    # f32 MXU path: tight parity with the dense reference math.
    out_f32 = gnn_encoder_forward(x, emb_table, weights, biases,
                                  compute_dtype=jnp.float32,
                                  out_dtype=jnp.float32)
    out_f32 = jax.block_until_ready(out_f32)
    assert out_f32.shape == (n_row, emb_dim)
    assert jnp.allclose(out_f32, ref, atol=5e-4, rtol=5e-4)

    # bf16 MXU inputs + f32 accumulation + bf16 writeback: the fast path.
    out_bf16 = gnn_encoder_forward(x, emb_table, weights, biases,
                                   compute_dtype=jnp.bfloat16)
    out_bf16 = jax.block_until_ready(out_bf16)
    assert out_bf16.shape == (n_row, emb_dim)
    assert jnp.allclose(out_bf16.astype(jnp.float32), ref, atol=1e-1, rtol=5e-2)

    print("KERNEL_OK")
</pallas_src>

<mosaic_0001>
module attributes {stable_mosaic.version = 11 : i64} {
  func.func @gcn_stack_kernel(%arg0: i32, %arg1: memref<8x128xf32, #tpu.memory_space<vmem>>, %arg2: memref<2x128x128xf32, #tpu.memory_space<vmem>>, %arg3: memref<2x128x128xf32, #tpu.memory_space<vmem>>, %arg4: memref<2x1x128xf32, #tpu.memory_space<vmem>>, %arg5: memref<8x128xf32, #tpu.memory_space<vmem>>) attributes {dimension_semantics = [#tpu.dimension_semantics<parallel>], iteration_bounds = array<i64: 1>, scalar_prefetch = 0 : i64, scratch_operands = 0 : i64, tpu.core_type = #tpu.core_type<tc>, window_params = [{transform_indices = @transform_0, window_bounds = array<i64: 8, 128>}, {pipeline_mode = #tpu.pipeline_mode<synchronous>, transform_indices = @transform_1, window_bounds = array<i64: 2, 128, 128>}, {pipeline_mode = #tpu.pipeline_mode<synchronous>, transform_indices = @transform_2, window_bounds = array<i64: 2, 128, 128>}, {pipeline_mode = #tpu.pipeline_mode<synchronous>, transform_indices = @transform_3, window_bounds = array<i64: 2, 1, 128>}, {transform_indices = @transform_4, window_bounds = array<i64: 8, 128>}]} {
    %c0 = arith.constant 0 : index
    %c0_0 = arith.constant 0 : index
    %0 = vector.load %arg1[%c0, %c0_0] : memref<8x128xf32, #tpu.memory_space<vmem>>, vector<8x128xf32>
    %cst = arith.constant dense<0.000000e+00> : vector<8xf32>
    %1 = vector.multi_reduction <add>, %0, %cst [1] : vector<8x128xf32> to vector<8xf32>
    %2 = vector.shape_cast %1 : vector<8xf32> to vector<8x1xf32>
    %cst_1 = arith.constant 1.000000e+00 : f32
    %3 = vector.broadcast %cst_1 : f32 to vector<8x1xf32>
    %4 = arith.addf %3, %2 : vector<8x1xf32>
    %5 = math.sqrt %4 : vector<8x1xf32>
    %cst_2 = arith.constant 1.000000e+00 : f32
    %6 = vector.broadcast %cst_2 : f32 to vector<8x1xf32>
    %7 = arith.divf %6, %5 : vector<8x1xf32>
    %cst_3 = arith.constant 1.000000e+00 : f32
    %8 = vector.broadcast %cst_3 : f32 to vector<8x1xf32>
    %9 = arith.divf %8, %4 : vector<8x1xf32>
    %10 = vector.broadcast %7 : vector<8x1xf32> to vector<8x128xf32>
    %11 = arith.mulf %10, %0 : vector<8x128xf32>
    %c0_4 = arith.constant 0 : index
    %c0_5 = arith.constant 0 : index
    %c0_6 = arith.constant 0 : index
    %12 = vector.load %arg2[%c0_4, %c0_5, %c0_6] : memref<2x128x128xf32, #tpu.memory_space<vmem>>, vector<1x128x128xf32>
    %13 = vector.shape_cast %12 : vector<1x128x128xf32> to vector<128x128xf32>
    %cst_7 = arith.constant dense<0.000000e+00> : vector<8x128xf32>
    %14 = tpu.matmul %11, %13, %cst_7 {dimension_numbers = #tpu.dot_dimension_numbers<[1], [0], [0], [1], [0, 0, 1, 1], [], []>} : vector<8x128xf32>, vector<128x128xf32>, vector<8x128xf32> -> vector<8x128xf32>
    %c0_8 = arith.constant 0 : index
    %c0_9 = arith.constant 0 : index
    %c0_10 = arith.constant 0 : index
    %15 = vector.load %arg4[%c0_8, %c0_9, %c0_10] : memref<2x1x128xf32, #tpu.memory_space<vmem>>, vector<1x1x128xf32>
    %16 = vector.shape_cast %15 : vector<1x1x128xf32> to vector<1x128xf32>
    %17 = vector.broadcast %16 : vector<1x128xf32> to vector<8x128xf32>
    %18 = arith.addf %14, %17 : vector<8x128xf32>
    %c1 = arith.constant 1 : index
    %c0_11 = arith.constant 0 : index
    %c0_12 = arith.constant 0 : index
    %19 = vector.load %arg2[%c1, %c0_11, %c0_12] : memref<2x128x128xf32, #tpu.memory_space<vmem>>, vector<1x128x128xf32>
    %20 = vector.shape_cast %19 : vector<1x128x128xf32> to vector<128x128xf32>
    %cst_13 = arith.constant dense<0.000000e+00> : vector<8x128xf32>
    %21 = tpu.matmul %11, %20, %cst_13 {dimension_numbers = #tpu.dot_dimension_numbers<[1], [0], [0], [1], [0, 0, 1, 1], [], []>} : vector<8x128xf32>, vector<128x128xf32>, vector<8x128xf32> -> vector<8x128xf32>
    %c1_14 = arith.constant 1 : index
    %c0_15 = arith.constant 0 : index
    %c0_16 = arith.constant 0 : index
    %22 = vector.load %arg3[%c1_14, %c0_15, %c0_16] : memref<2x128x128xf32, #tpu.memory_space<vmem>>, vector<1x128x128xf32>
    %23 = vector.shape_cast %22 : vector<1x128x128xf32> to vector<128x128xf32>
    %cst_17 = arith.constant dense<0.000000e+00> : vector<8x128xf32>
    %24 = tpu.matmul %18, %23, %cst_17 {dimension_numbers = #tpu.dot_dimension_numbers<[1], [0], [0], [1], [0, 0, 1, 1], [], []>} : vector<8x128xf32>, vector<128x128xf32>, vector<8x128xf32> -> vector<8x128xf32>
    %25 = vector.broadcast %9 : vector<8x1xf32> to vector<8x128xf32>
    %26 = arith.mulf %25, %24 : vector<8x128xf32>
    %27 = arith.addf %26, %21 : vector<8x128xf32>
    %c1_18 = arith.constant 1 : index
    %c0_19 = arith.constant 0 : index
    %c0_20 = arith.constant 0 : index
    %28 = vector.load %arg4[%c1_18, %c0_19, %c0_20] : memref<2x1x128xf32, #tpu.memory_space<vmem>>, vector<1x1x128xf32>
    %29 = vector.shape_cast %28 : vector<1x1x128xf32> to vector<1x128xf32>
    %30 = vector.broadcast %29 : vector<1x128xf32> to vector<8x128xf32>
    %31 = arith.addf %27, %30 : vector<8x128xf32>
    %c0_21 = arith.constant 0 : index
    %c0_22 = arith.constant 0 : index
    %32 = vector.load %arg5[%c0_21, %c0_22] : memref<8x128xf32, #tpu.memory_space<vmem>>, vector<8x128xf32>
    tpu.vector_store %arg5[%c0_21, %c0_22], %31 {strides = array<i32>} : memref<8x128xf32, #tpu.memory_space<vmem>>, vector<8x128xf32>,
    return
  }
  func.func @transform_0(%arg0: i32) -> (i32, i32) {
    %c0_i32 = arith.constant 0 : i32
    %c0_i32_0 = arith.constant 0 : i32
    return %arg0, %c0_i32 : i32, i32
  }
  func.func @transform_1(%arg0: i32) -> (i32, i32, i32) {
    %c0_i32 = arith.constant 0 : i32
    %c0_i32_0 = arith.constant 0 : i32
    %c0_i32_1 = arith.constant 0 : i32
    %c0_i32_2 = arith.constant 0 : i32
    return %c0_i32, %c0_i32_0, %c0_i32_1 : i32, i32, i32
  }
  func.func @transform_2(%arg0: i32) -> (i32, i32, i32) {
    %c0_i32 = arith.constant 0 : i32
    %c0_i32_0 = arith.constant 0 : i32
    %c0_i32_1 = arith.constant 0 : i32
    %c0_i32_2 = arith.constant 0 : i32
    return %c0_i32, %c0_i32_0, %c0_i32_1 : i32, i32, i32
  }
  func.func @transform_3(%arg0: i32) -> (i32, i32, i32) {
    %c0_i32 = arith.constant 0 : i32
    %c0_i32_0 = arith.constant 0 : i32
    %c0_i32_1 = arith.constant 0 : i32
    %c0_i32_2 = arith.constant 0 : i32
    return %c0_i32, %c0_i32_0, %c0_i32_1 : i32, i32, i32
  }
  func.func @transform_4(%arg0: i32) -> (i32, i32) {
    %c0_i32 = arith.constant 0 : i32
    %c0_i32_0 = arith.constant 0 : i32
    return %arg0, %c0_i32 : i32, i32
  }
}

module attributes {stable_mosaic.version = 11 : i64} {
  func.func @gcn_stack_kernel(%arg0: i32, %arg1: memref<8x128xf32, #tpu.memory_space<vmem>>, %arg2: memref<2x128x128xf32, #tpu.memory_space<vmem>>, %arg3: memref<2x128x128xf32, #tpu.memory_space<vmem>>, %arg4: memref<2x1x128xf32, #tpu.memory_space<vmem>>, %arg5: memref<8x128xf32, #tpu.memory_space<vmem>>) attributes {dimension_semantics = [#tpu.dimension_semantics<parallel>], iteration_bounds = array<i64: 1>, scalar_prefetch = 0 : i64, scratch_operands = 0 : i64, tpu.core_type = #tpu.core_type<tc>, window_params = [{transform_indices = @transform_0, window_bounds = array<i64: 8, 128>}, {pipeline_mode = #tpu.pipeline_mode<synchronous>, transform_indices = @transform_1, window_bounds = array<i64: 2, 128, 128>}, {pipeline_mode = #tpu.pipeline_mode<synchronous>, transform_indices = @transform_2, window_bounds = array<i64: 2, 128, 128>}, {pipeline_mode = #tpu.pipeline_mode<synchronous>, transform_indices = @transform_3, window_bounds = array<i64: 2, 1, 128>}, {transform_indices = @transform_4, window_bounds = array<i64: 8, 128>}]} {
    %c0 = arith.constant 0 : index
    %c0_0 = arith.constant 0 : index
    %0 = vector.load %arg1[%c0, %c0_0] : memref<8x128xf32, #tpu.memory_space<vmem>>, vector<8x128xf32>
    %cst = arith.constant dense<0.000000e+00> : vector<8xf32>
    %1 = vector.multi_reduction <add>, %0, %cst [1] : vector<8x128xf32> to vector<8xf32>
    %2 = vector.shape_cast %1 : vector<8xf32> to vector<8x1xf32>
    %cst_1 = arith.constant 1.000000e+00 : f32
    %3 = vector.broadcast %cst_1 : f32 to vector<8x1xf32>
    %4 = arith.addf %3, %2 : vector<8x1xf32>
    %5 = math.sqrt %4 : vector<8x1xf32>
    %cst_2 = arith.constant 1.000000e+00 : f32
    %6 = vector.broadcast %cst_2 : f32 to vector<8x1xf32>
    %7 = arith.divf %6, %5 : vector<8x1xf32>
    %cst_3 = arith.constant 1.000000e+00 : f32
    %8 = vector.broadcast %cst_3 : f32 to vector<8x1xf32>
    %9 = arith.divf %8, %4 : vector<8x1xf32>
    %10 = vector.broadcast %7 : vector<8x1xf32> to vector<8x128xf32>
    %11 = arith.mulf %10, %0 : vector<8x128xf32>
    %c0_4 = arith.constant 0 : index
    %c0_5 = arith.constant 0 : index
    %c0_6 = arith.constant 0 : index
    %12 = vector.load %arg2[%c0_4, %c0_5, %c0_6] : memref<2x128x128xf32, #tpu.memory_space<vmem>>, vector<1x128x128xf32>
    %13 = vector.shape_cast %12 : vector<1x128x128xf32> to vector<128x128xf32>
    %cst_7 = arith.constant dense<0.000000e+00> : vector<8x128xf32>
    %14 = tpu.matmul %11, %13, %cst_7 {dimension_numbers = #tpu.dot_dimension_numbers<[1], [0], [0], [1], [0, 0, 1, 1], [], []>} : vector<8x128xf32>, vector<128x128xf32>, vector<8x128xf32> -> vector<8x128xf32>
    %c0_8 = arith.constant 0 : index
    %c0_9 = arith.constant 0 : index
    %c0_10 = arith.constant 0 : index
    %15 = vector.load %arg4[%c0_8, %c0_9, %c0_10] : memref<2x1x128xf32, #tpu.memory_space<vmem>>, vector<1x1x128xf32>
    %16 = vector.shape_cast %15 : vector<1x1x128xf32> to vector<1x128xf32>
    %17 = vector.broadcast %16 : vector<1x128xf32> to vector<8x128xf32>
    %18 = arith.addf %14, %17 : vector<8x128xf32>
    %c1 = arith.constant 1 : index
    %c0_11 = arith.constant 0 : index
    %c0_12 = arith.constant 0 : index
    %19 = vector.load %arg2[%c1, %c0_11, %c0_12] : memref<2x128x128xf32, #tpu.memory_space<vmem>>, vector<1x128x128xf32>
    %20 = vector.shape_cast %19 : vector<1x128x128xf32> to vector<128x128xf32>
    %cst_13 = arith.constant dense<0.000000e+00> : vector<8x128xf32>
    %21 = tpu.matmul %11, %20, %cst_13 {dimension_numbers = #tpu.dot_dimension_numbers<[1], [0], [0], [1], [0, 0, 1, 1], [], []>} : vector<8x128xf32>, vector<128x128xf32>, vector<8x128xf32> -> vector<8x128xf32>
    %c1_14 = arith.constant 1 : index
    %c0_15 = arith.constant 0 : index
    %c0_16 = arith.constant 0 : index
    %22 = vector.load %arg3[%c1_14, %c0_15, %c0_16] : memref<2x128x128xf32, #tpu.memory_space<vmem>>, vector<1x128x128xf32>
    %23 = vector.shape_cast %22 : vector<1x128x128xf32> to vector<128x128xf32>
    %cst_17 = arith.constant dense<0.000000e+00> : vector<8x128xf32>
    %24 = tpu.matmul %18, %23, %cst_17 {dimension_numbers = #tpu.dot_dimension_numbers<[1], [0], [0], [1], [0, 0, 1, 1], [], []>} : vector<8x128xf32>, vector<128x128xf32>, vector<8x128xf32> -> vector<8x128xf32>
    %25 = vector.broadcast %9 : vector<8x1xf32> to vector<8x128xf32>
    %26 = arith.mulf %25, %24 : vector<8x128xf32>
    %27 = arith.addf %26, %21 : vector<8x128xf32>
    %c1_18 = arith.constant 1 : index
    %c0_19 = arith.constant 0 : index
    %c0_20 = arith.constant 0 : index
    %28 = vector.load %arg4[%c1_18, %c0_19, %c0_20] : memref<2x1x128xf32, #tpu.memory_space<vmem>>, vector<1x1x128xf32>
    %29 = vector.shape_cast %28 : vector<1x1x128xf32> to vector<1x128xf32>
    %30 = vector.broadcast %29 : vector<1x128xf32> to vector<8x128xf32>
    %31 = arith.addf %27, %30 : vector<8x128xf32>
    %c0_21 = arith.constant 0 : index
    %c0_22 = arith.constant 0 : index
    %32 = vector.load %arg5[%c0_21, %c0_22] : memref<8x128xf32, #tpu.memory_space<vmem>>, vector<8x128xf32>
    tpu.vector_store %arg5[%c0_21, %c0_22], %31 {strides = array<i32>} : memref<8x128xf32, #tpu.memory_space<vmem>>, vector<8x128xf32>,
    return
  }
  func.func @transform_0(%arg0: i32) -> (i32, i32) {
    %c0_i32 = arith.constant 0 : i32
    %c0_i32_0 = arith.constant 0 : i32
    return %arg0, %c0_i32 : i32, i32
  }
  func.func @transform_1(%arg0: i32) -> (i32, i32, i32) {
    %c0_i32 = arith.constant 0 : i32
    %c0_i32_0 = arith.constant 0 : i32
    %c0_i32_1 = arith.constant 0 : i32
    %c0_i32_2 = arith.constant 0 : i32
    return %c0_i32, %c0_i32_0, %c0_i32_1 : i32, i32, i32
  }
  func.func @transform_2(%arg0: i32) -> (i32, i32, i32) {
    %c0_i32 = arith.constant 0 : i32
    %c0_i32_0 = arith.constant 0 : i32
    %c0_i32_1 = arith.constant 0 : i32
    %c0_i32_2 = arith.constant 0 : i32
    return %c0_i32, %c0_i32_0, %c0_i32_1 : i32, i32, i32
  }
  func.func @transform_3(%arg0: i32) -> (i32, i32, i32) {
    %c0_i32 = arith.constant 0 : i32
    %c0_i32_0 = arith.constant 0 : i32
    %c0_i32_1 = arith.constant 0 : i32
    %c0_i32_2 = arith.constant 0 : i32
    return %c0_i32, %c0_i32_0, %c0_i32_1 : i32, i32, i32
  }
  func.func @transform_4(%arg0: i32) -> (i32, i32) {
    %c0_i32 = arith.constant 0 : i32
    %c0_i32_0 = arith.constant 0 : i32
    return %arg0, %c0_i32 : i32, i32
  }
}

</mosaic_0001>

<bundles_post_ra>
// kernel: tpu_custom_call.1
= control target key start
LH: loop header
LB: loop body
LE: loop exit
PB: predicated region body
PF: predicated region fallthrough
CT: control target
= control target key end

     0   :  { %9 = vsyncpa [#allocation3], 0  ;;  %s421_s0 = inlined_call_operand.hbm [shape: f32[8,128], index: 0, kind: input, shape index: {}]   ;;  %s422_s1 = inlined_call_operand.hbm [shape: f32[2,128,128], index: 1, kind: input, shape index: {}]   ;;  %s423_s2 = inlined_call_operand.hbm [shape: f32[2,128,128], index: 2, kind: input, shape index: {}]   ;;  %s424_s3 = inlined_call_operand.vmem [shape: f32[2,1,128], index: 3, kind: input, shape index: {}]   ;;  %s425_s4 = inlined_call_operand.hbm [shape: f32[8,128], index: 4, kind: output, shape index: {}]  }
   0x1   :  { %10 = vsyncpa [#allocation6], 0  ;;  %s27_s17 = sshll.u32 %s422_s1, 4  ;;  %s28_s17 = int_to_ptr.hbm [resolvable:$true] %s27_s17 }
   0x2   :  { %11 = vsyncpa [#allocation4], 0  ;;  %s368_s18 = smov [#allocation5]   ;;  %s17_s22 = sshll.u32 %s421_s0, 4  ;;  %s18_s22 = int_to_ptr.hbm [resolvable:$true] %s17_s22 }
   0x3   :  { %s29_s19 = sshll.u32 %s368_s18, 4  ;;  %s369_s23 = smov 128   ;;  %s30_s19 = int_to_ptr.vmem [resolvable:$true] %s29_s19 }
   0x4   :  { %s370_s24 = smov 8   ;;  %s371_s25 = smov [#allocation2]  }
   0x5   :  { %35 = dma.hbm_to_vmem [thread:$0]  %s28_s17, 4096, %s30_s19, [#allocation6], %s369_s23, %s369_s23, %s370_s24  }
   0x6   :  { %s19_s26 = sshll.u32 %s371_s25, 4  ;;  %s40_s29 = sshll.u32 %s423_s2, 4  ;;  %s20_s26 = int_to_ptr.vmem [resolvable:$true] %s19_s26  ;;  %s41_s29 = int_to_ptr.hbm [resolvable:$true] %s40_s29 }
   0x7   :  { %22 = dma.hbm_to_vmem [thread:$0]  %s18_s22, 128, %s20_s26, [#allocation3]  }
   0x8   :  { %s372_s1 = smov [#allocation7]  }
   0x9   :  { %s42_s30 = sshll.u32 %s372_s1, 4  ;;  %s43_s30 = int_to_ptr.vmem [resolvable:$true] %s42_s30 }
   0xa   :  { %48 = dma.hbm_to_vmem [thread:$0]  %s41_s29, 4096, %s43_s30, [#allocation6], %s369_s23, %s369_s23, %s370_s24  }
   0xb   :  { %362 = dma.done.wait [#allocation3], 128  }
   0xc   :  { %363 = vsyncadd [#allocation3], 4294967168 }
   0xd   :  { %364 = dma.done.wait [#allocation6], 8192  }
   0xe   :  { %365 = vsyncadd [#allocation6], 4294959104  ;;  %v408_v0 = vld [vmem:[#allocation2] sm:$0xff]  ;;  %v124_v3 = vld [vmem:[#allocation5 + $0x70] sm:$0xff]  ;;  %s373_s7 = smov [#allocation8]   ;;  %s240_s11 = sshll.u32 %s425_s4, 4  ;;  %s241_s11 = int_to_ptr.hbm [resolvable:$true] %s240_s11 }
   0xf   :  { %64 = vadd.xlane.f32.xlu0 %v408_v0  ;;  %v125_v1 = vld [vmem:[#allocation5 + $0x78] sm:$0xff]  ;;  %v165_v4 = vld [vmem:[#allocation5 + $0xf0] sm:$0xff]  ;;  %v123_v5 = vld [vmem:[#allocation5 + $0x68] sm:$0xff]  ;;  %s238_s8 = sshll.u32 %s373_s7, 4  ;;  %s239_s8 = int_to_ptr.vmem [resolvable:$true] %s238_s8 }
  0x10   :  { %v166_v2 = vld [vmem:[#allocation5 + $0xf8] sm:$0xff]  ;;  %130 = vmatpush.msra.mxu0 %v125_v1  ;;  %v164_v6 = vld [vmem:[#allocation5 + $0xe8] sm:$0xff]  ;;  %v122_v7 = vld [vmem:[#allocation5 + $0x60] sm:$0xff] }
  0x11   :  { %167 = vmatpush.msra.mxu1 %v166_v2  ;;  %v163_v8 = vld [vmem:[#allocation5 + $0xe0] sm:$0xff]  ;;  %v121_v9 = vld [vmem:[#allocation5 + $0x58] sm:$0xff]  ;;  %v120_v11 = vld [vmem:[#allocation5 + $0x50] sm:$0xff] }
  0x12   :  { %131 = vmatpush.msra.mxu0 %v124_v3  ;;  %v162_v10 = vld [vmem:[#allocation5 + $0xd8] sm:$0xff]  ;;  %v161_v12 = vld [vmem:[#allocation5 + $0xd0] sm:$0xff]  ;;  %v119_v13 = vld [vmem:[#allocation5 + $0x48] sm:$0xff] }
  0x13   :  { %168 = vmatpush.msra.mxu1 %v165_v4  ;;  %v160_v14 = vld [vmem:[#allocation5 + $0xc8] sm:$0xff]  ;;  %v118_v15 = vld [vmem:[#allocation5 + $0x40] sm:$0xff]  ;;  %v117_v17 = vld [vmem:[#allocation5 + $0x38] sm:$0xff] }
  0x14   :  { %132 = vmatpush.msra.mxu0 %v123_v5  ;;  %v159_v16 = vld [vmem:[#allocation5 + $0xc0] sm:$0xff]  ;;  %v158_v18 = vld [vmem:[#allocation5 + $0xb8] sm:$0xff]  ;;  %v116_v19 = vld [vmem:[#allocation5 + $0x30] sm:$0xff] }
  0x15   :  { %169 = vmatpush.msra.mxu1 %v164_v6  ;;  %v157_v20 = vld [vmem:[#allocation5 + $0xb0] sm:$0xff]  ;;  %v115_v21 = vld [vmem:[#allocation5 + $0x28] sm:$0xff]  ;;  %v114_v23 = vld [vmem:[#allocation5 + $0x20] sm:$0xff] }
  0x16   :  { %133 = vmatpush.msra.mxu0 %v122_v7  ;;  %v156_v22 = vld [vmem:[#allocation5 + $0xa8] sm:$0xff]  ;;  %v155_v24 = vld [vmem:[#allocation5 + $0xa0] sm:$0xff]  ;;  %v113_v25 = vld [vmem:[#allocation5 + $0x18] sm:$0xff] }
  0x17   :  { %170 = vmatpush.msra.mxu1 %v163_v8  ;;  %v154_v26 = vld [vmem:[#allocation5 + $0x98] sm:$0xff]  ;;  %v112_v27 = vld [vmem:[#allocation5 + $0x10] sm:$0xff]  ;;  %v111_v29 = vld [vmem:[#allocation5 + $0x8] sm:$0xff] }
  0x18   :  { %134 = vmatpush.msra.mxu0 %v121_v9  ;;  %v153_v28 = vld [vmem:[#allocation5 + $0x90] sm:$0xff]  ;;  %v152_v30 = vld [vmem:[#allocation5 + $0x88] sm:$0xff]  ;;  %v110_v31 = vld [vmem:[#allocation5] sm:$0xff] }
  0x19   :  { %171 = vmatpush.msra.mxu1 %v162_v10  ;;  %v151_v32 = vld [vmem:[#allocation5 + $0x80] sm:$0xff]  ;;  %v203_v38 = vld [vmem:[#allocation7 + $0xf8] sm:$0xff]  ;;  %v202_v39 = vld [vmem:[#allocation7 + $0xf0] sm:$0xff] }
  0x1a   :  { %135 = vmatpush.msra.mxu0 %v120_v11  ;;  %204 = vmatpush.msra.mxu2 %v203_v38  ;;  %v201_v42 = vld [vmem:[#allocation7 + $0xe8] sm:$0xff]  ;;  %v200_v46 = vld [vmem:[#allocation7 + $0xe0] sm:$0xff]  ;;  %v199_v50 = vld [vmem:[#allocation7 + $0xd8] sm:$0xff] }
  0x1b   :  { %172 = vmatpush.msra.mxu1 %v161_v12  ;;  %v198_v54 = vld [vmem:[#allocation7 + $0xd0] sm:$0xff]  ;;  %v197_v58 = vld [vmem:[#allocation7 + $0xc8] sm:$0xff]  ;;  %v196_v61 = vld [vmem:[#allocation7 + $0xc0] sm:$0xff] }
  0x1c   :  { %136 = vmatpush.msra.mxu0 %v119_v13  ;;  %205 = vmatpush.msra.mxu2 %v202_v39  ;;  %v195_v62 = vld [vmem:[#allocation7 + $0xb8] sm:$0xff]  ;;  %v194_v63 = vld [vmem:[#allocation7 + $0xb0] sm:$0xff]  ;;  %v193_v1 = vld [vmem:[#allocation7 + $0xa8] sm:$0xff] }
  0x1d   :  { %173 = vmatpush.msra.mxu1 %v160_v14  ;;  %v192_v4 = vld [vmem:[#allocation7 + $0xa0] sm:$0xff]  ;;  %v191_v6 = vld [vmem:[#allocation7 + $0x98] sm:$0xff]  ;;  %v190_v10 = vld [vmem:[#allocation7 + $0x90] sm:$0xff] }
  0x1e   :  { %137 = vmatpush.msra.mxu0 %v118_v15  ;;  %206 = vmatpush.msra.mxu2 %v201_v42 }
  0x1f   :  { %174 = vmatpush.msra.mxu1 %v159_v16  ;;  %v189_v16 = vld [vmem:[#allocation7 + $0x88] sm:$0xff] }
  0x20   :  { %138 = vmatpush.msra.mxu0 %v117_v17  ;;  %207 = vmatpush.msra.mxu2 %v200_v46  ;;  %v188_v17 = vld [vmem:[#allocation7 + $0x80] sm:$0xff] }
  0x21   :  { %175 = vmatpush.msra.mxu1 %v158_v18  ;;  %v258_v18 = vld [vmem:[%s424_s3] ss:$0 sm:$0xff] }
  0x22   :  { %139 = vmatpush.msra.mxu0 %v116_v19  ;;  %208 = vmatpush.msra.mxu2 %v199_v50 }
  0x23   :  { %176 = vmatpush.msra.mxu1 %v157_v20 }
  0x24   :  { %140 = vmatpush.msra.mxu0 %v115_v21  ;;  %209 = vmatpush.msra.mxu2 %v198_v54 }
  0x25   :  { %177 = vmatpush.msra.mxu1 %v156_v22 }
  0x26   :  { %141 = vmatpush.msra.mxu0 %v114_v23  ;;  %210 = vmatpush.msra.mxu2 %v197_v58  ;;  %v259_v23 = vld [vmem:[%s424_s3 + $0x1] ss:$0 sm:$0xff] }
  0x27   :  { %178 = vmatpush.msra.mxu1 %v155_v24 }
  0x28   :  { %142 = vmatpush.msra.mxu0 %v113_v25  ;;  %211 = vmatpush.msra.mxu2 %v196_v61 }
  0x29   :  { %179 = vmatpush.msra.mxu1 %v154_v26 }
  0x2a   :  { %143 = vmatpush.msra.mxu0 %v112_v27  ;;  %212 = vmatpush.msra.mxu2 %v195_v62 }
  0x2b   :  { %180 = vmatpush.msra.mxu1 %v153_v28 }
  0x2c   :  { %144 = vmatpush.msra.mxu0 %v111_v29  ;;  %213 = vmatpush.msra.mxu2 %v194_v63 }
  0x2d   :  { %181 = vmatpush.msra.mxu1 %v152_v30 }
  0x2e   :  { %145 = vmatpush.msra.mxu0 %v110_v31  ;;  %214 = vmatpush.msra.mxu2 %v193_v1 }
  0x2f   :  { %182 = vmatpush.msra.mxu1 %v151_v32 }
  0x30   :  { %215 = vmatpush.msra.mxu2 %v192_v4 }
  0x32   :  { %216 = vmatpush.msra.mxu2 %v191_v6 }
  0x34   :  { %217 = vmatpush.msra.mxu2 %v190_v10 }
  0x36   :  { %218 = vmatpush.msra.mxu2 %v189_v16 }
  0x38   :  { %219 = vmatpush.msra.mxu2 %v188_v17 }
  0x82   :  { %v65_v33 = vpop.xlane.xlu0 %64 }
  0x83   :  { %v66_v34 = vadd.f32 1.0, %v65_v33 }
  0x85   :  { %260 = vrsqrt.f32 %v66_v34  ;;  %v77_v45 = vand.u32 2147483648, %v66_v34  ;;  %v103_v48 = vand.u32 2147483647, %v66_v34  ;;  %vm99_vm1 = vweird.f32 %v66_v34 }
  0x86   :  { %262 = vrcp.f32 %v66_v34  ;;  %vm74_vm4 = vcmp.eq.f32.partialorder %v66_v34, inf  ;;  %vm76_vm5 = vcmp.eq.f32.partialorder %v66_v34, 0.0 }
  0x87   :  { %v106_v53 = vor.u32 1.1754944e-38, %v77_v45  ;;  %vm104_vm3 = vcmp.eq.f32.partialorder %v103_v48, 8.507059e+37 }
  0x8b   :  { %v261_v35 = vpop.eup %260 }
  0x8c   :  { %v263_v36 = vpop.eup %262  ;;  %v68_v37 = vmul.f32 %v261_v35, %v66_v34 }
  0x8d   :  { %v95_v40 = vmul.f32 %v263_v36, %v66_v34  ;;  %vm100_vm0 = vweird.f32 %v263_v36 }
  0x8e   :  { %v69_v41 = vmul.f32 %v261_v35, %v68_v37  ;;  %vm101_vm2 = vmor %vm99_vm1, %vm100_vm0 }
  0x8f   :  { %v96_v43 = vsub.f32 1.0, %v95_v40 }
  0x90   :  { %v70_v44 = vmul.f32 0.5, %v69_v41 }
  0x91   :  { %v97_v47 = vmul.f32 %v263_v36, %v96_v43 }
  0x92   :  { %v71_v49 = vsub.f32 1.5, %v70_v44 }
  0x93   :  { %v98_v51 = vadd.f32 %v263_v36, %v97_v47 }
  0x94   :  { %v72_v52 = vmul.f32 %v261_v35, %v71_v49 }
  0x95   :  { %v102_v55 = vsel %vm101_vm2, %v263_v36, %v98_v51 }
  0x96   :  { %v73_v56 = vmul.f32 %v72_v52, %v66_v34  ;;  %v107_v57 = vsel %vm104_vm3, %v106_v53, %v102_v55 }
  0x98   :  { %v75_v59 = vsel %vm74_vm4, %v66_v34, %v73_v56 }
  0x99   :  { %v78_v60 = vsel %vm76_vm5, %v77_v45, %v75_v59 }
  0x9a   :  { %264 = vrcp.f32 %v78_v60  ;;  %v90_v7 = vand.u32 2147483648, %v78_v60  ;;  %v88_v9 = vand.u32 2147483647, %v78_v60  ;;  %vm84_vm7 = vweird.f32 %v78_v60 }
  0x9c   :  { %v91_v12 = vor.u32 1.1754944e-38, %v90_v7  ;;  %vm89_vm9 = vcmp.eq.f32.partialorder %v88_v9, 8.507059e+37 }
  0xa0   :  { %v265_v2 = vpop.eup %264 }
  0xa1   :  { %v80_v3 = vmul.f32 %v265_v2, %v78_v60  ;;  %vm85_vm6 = vweird.f32 %v265_v2 }
  0xa2   :  { %vm86_vm8 = vmor %vm84_vm7, %vm85_vm6 }
  0xa3   :  { %v81_v5 = vsub.f32 1.0, %v80_v3 }
  0xa5   :  { %v82_v8 = vmul.f32 %v265_v2, %v81_v5 }
  0xa7   :  { %v83_v11 = vadd.f32 %v265_v2, %v82_v8 }
  0xa9   :  { %v87_v13 = vsel %vm86_vm8, %v265_v2, %v83_v11 }
  0xaa   :  { %v92_v14 = vsel %vm89_vm9, %v91_v12, %v87_v13 }
  0xab   :  { %v109_v15 = vmul.f32 %v92_v14, %v408_v0 }
  0xad   :  { %146 = vmatmul.f32.vlgmr.msra.gmra.mxu0 %v109_v15  ;;  %183 = vmatmul.f32.vlgmr.msra.gmra.mxu1 %v109_v15 }
 0x12a   :  { %v147_v19 = vpop.f32.mrf.mxu0  ;;  %v184_v0 = vpop.f32.mrf.mxu1 }
 0x12b   :  { %v148_v20 = vadd.f32 %v258_v18, %v147_v19 }
 0x12d   :  { %220 = vmatmul.f32.vlgmr.msra.gmra.mxu2 %v148_v20 }
 0x1b0   :  { %v221_v21 = vpop.f32.mrf.mxu2 }
 0x1b1   :  { %v224_v22 = vmul.f32 %v221_v21, %v107_v57 }
 0x1b3   :  { %v225_v24 = vadd.f32 %v224_v22, %v184_v0 }
 0x1b5   :  { %v231_v25 = vadd.f32 %v259_v23, %v225_v24 }
 0x1b7   :  { %232 = vst [vmem:[#allocation8] sm:$0xff] %v231_v25 }
 0x1b8   :  { %243 = dma.vmem_to_hbm [thread:$0]  %s239_s8, 128, %s241_s11, [#allocation4]  }
 0x1b9   :  { %366 = dma.done.wait [#allocation4], 128  }
 0x1ba   :  { %367 = vsyncadd [#allocation4], 4294967168 }
 0x1bb   :  { %248 = vsyncpa [#allocation3], 1 }
 0x1bc   :  { %249 = vsyncpa [#allocation6], 1 }
 0x1bd   :  { %250 = vsyncpa [#allocation4], 1 }

// kernel: tpu_custom_call.1
= control target key start
LH: loop header
LB: loop body
LE: loop exit
PB: predicated region body
PF: predicated region fallthrough
CT: control target
= control target key end

     0   :  { %9 = vsyncpa [#allocation3], 0  ;;  %s421_s0 = inlined_call_operand.hbm [shape: f32[8,128], index: 0, kind: input, shape index: {}]   ;;  %s422_s1 = inlined_call_operand.hbm [shape: f32[2,128,128], index: 1, kind: input, shape index: {}]   ;;  %s423_s2 = inlined_call_operand.hbm [shape: f32[2,128,128], index: 2, kind: input, shape index: {}]   ;;  %s424_s3 = inlined_call_operand.vmem [shape: f32[2,1,128], index: 3, kind: input, shape index: {}]   ;;  %s425_s4 = inlined_call_operand.hbm [shape: f32[8,128], index: 4, kind: output, shape index: {}]  }
   0x1   :  { %10 = vsyncpa [#allocation6], 0  ;;  %s27_s17 = sshll.u32 %s422_s1, 4  ;;  %s28_s17 = int_to_ptr.hbm [resolvable:$true] %s27_s17 }
   0x2   :  { %11 = vsyncpa [#allocation4], 0  ;;  %s368_s18 = smov [#allocation5]   ;;  %s17_s22 = sshll.u32 %s421_s0, 4  ;;  %s18_s22 = int_to_ptr.hbm [resolvable:$true] %s17_s22 }
   0x3   :  { %s29_s19 = sshll.u32 %s368_s18, 4  ;;  %s369_s23 = smov 128   ;;  %s30_s19 = int_to_ptr.vmem [resolvable:$true] %s29_s19 }
   0x4   :  { %s370_s24 = smov 8   ;;  %s371_s25 = smov [#allocation2]  }
   0x5   :  { %35 = dma.hbm_to_vmem [thread:$0]  %s28_s17, 4096, %s30_s19, [#allocation6], %s369_s23, %s369_s23, %s370_s24  }
   0x6   :  { %s19_s26 = sshll.u32 %s371_s25, 4  ;;  %s40_s29 = sshll.u32 %s423_s2, 4  ;;  %s20_s26 = int_to_ptr.vmem [resolvable:$true] %s19_s26  ;;  %s41_s29 = int_to_ptr.hbm [resolvable:$true] %s40_s29 }
   0x7   :  { %22 = dma.hbm_to_vmem [thread:$0]  %s18_s22, 128, %s20_s26, [#allocation3]  }
   0x8   :  { %s372_s1 = smov [#allocation7]  }
   0x9   :  { %s42_s30 = sshll.u32 %s372_s1, 4  ;;  %s43_s30 = int_to_ptr.vmem [resolvable:$true] %s42_s30 }
   0xa   :  { %48 = dma.hbm_to_vmem [thread:$0]  %s41_s29, 4096, %s43_s30, [#allocation6], %s369_s23, %s369_s23, %s370_s24  }
   0xb   :  { %362 = dma.done.wait [#allocation3], 128  }
   0xc   :  { %363 = vsyncadd [#allocation3], 4294967168 }
   0xd   :  { %364 = dma.done.wait [#allocation6], 8192  }
   0xe   :  { %365 = vsyncadd [#allocation6], 4294959104  ;;  %v408_v0 = vld [vmem:[#allocation2] sm:$0xff]  ;;  %v124_v3 = vld [vmem:[#allocation5 + $0x70] sm:$0xff]  ;;  %s373_s7 = smov [#allocation8]   ;;  %s240_s11 = sshll.u32 %s425_s4, 4  ;;  %s241_s11 = int_to_ptr.hbm [resolvable:$true] %s240_s11 }
   0xf   :  { %64 = vadd.xlane.f32.xlu0 %v408_v0  ;;  %v125_v1 = vld [vmem:[#allocation5 + $0x78] sm:$0xff]  ;;  %v165_v4 = vld [vmem:[#allocation5 + $0xf0] sm:$0xff]  ;;  %v123_v5 = vld [vmem:[#allocation5 + $0x68] sm:$0xff]  ;;  %s238_s8 = sshll.u32 %s373_s7, 4  ;;  %s239_s8 = int_to_ptr.vmem [resolvable:$true] %s238_s8 }
  0x10   :  { %v166_v2 = vld [vmem:[#allocation5 + $0xf8] sm:$0xff]  ;;  %130 = vmatpush.msra.mxu0 %v125_v1  ;;  %v164_v6 = vld [vmem:[#allocation5 + $0xe8] sm:$0xff]  ;;  %v122_v7 = vld [vmem:[#allocation5 + $0x60] sm:$0xff] }
  0x11   :  { %167 = vmatpush.msra.mxu1 %v166_v2  ;;  %v163_v8 = vld [vmem:[#allocation5 + $0xe0] sm:$0xff]  ;;  %v121_v9 = vld [vmem:[#allocation5 + $0x58] sm:$0xff]  ;;  %v120_v11 = vld [vmem:[#allocation5 + $0x50] sm:$0xff] }
  0x12   :  { %131 = vmatpush.msra.mxu0 %v124_v3  ;;  %v162_v10 = vld [vmem:[#allocation5 + $0xd8] sm:$0xff]  ;;  %v161_v12 = vld [vmem:[#allocation5 + $0xd0] sm:$0xff]  ;;  %v119_v13 = vld [vmem:[#allocation5 + $0x48] sm:$0xff] }
  0x13   :  { %168 = vmatpush.msra.mxu1 %v165_v4  ;;  %v160_v14 = vld [vmem:[#allocation5 + $0xc8] sm:$0xff]  ;;  %v118_v15 = vld [vmem:[#allocation5 + $0x40] sm:$0xff]  ;;  %v117_v17 = vld [vmem:[#allocation5 + $0x38] sm:$0xff] }
  0x14   :  { %132 = vmatpush.msra.mxu0 %v123_v5  ;;  %v159_v16 = vld [vmem:[#allocation5 + $0xc0] sm:$0xff]  ;;  %v158_v18 = vld [vmem:[#allocation5 + $0xb8] sm:$0xff]  ;;  %v116_v19 = vld [vmem:[#allocation5 + $0x30] sm:$0xff] }
  0x15   :  { %169 = vmatpush.msra.mxu1 %v164_v6  ;;  %v157_v20 = vld [vmem:[#allocation5 + $0xb0] sm:$0xff]  ;;  %v115_v21 = vld [vmem:[#allocation5 + $0x28] sm:$0xff]  ;;  %v114_v23 = vld [vmem:[#allocation5 + $0x20] sm:$0xff] }
  0x16   :  { %133 = vmatpush.msra.mxu0 %v122_v7  ;;  %v156_v22 = vld [vmem:[#allocation5 + $0xa8] sm:$0xff]  ;;  %v155_v24 = vld [vmem:[#allocation5 + $0xa0] sm:$0xff]  ;;  %v113_v25 = vld [vmem:[#allocation5 + $0x18] sm:$0xff] }
  0x17   :  { %170 = vmatpush.msra.mxu1 %v163_v8  ;;  %v154_v26 = vld [vmem:[#allocation5 + $0x98] sm:$0xff]  ;;  %v112_v27 = vld [vmem:[#allocation5 + $0x10] sm:$0xff]  ;;  %v111_v29 = vld [vmem:[#allocation5 + $0x8] sm:$0xff] }
  0x18   :  { %134 = vmatpush.msra.mxu0 %v121_v9  ;;  %v153_v28 = vld [vmem:[#allocation5 + $0x90] sm:$0xff]  ;;  %v152_v30 = vld [vmem:[#allocation5 + $0x88] sm:$0xff]  ;;  %v110_v31 = vld [vmem:[#allocation5] sm:$0xff] }
  0x19   :  { %171 = vmatpush.msra.mxu1 %v162_v10  ;;  %v151_v32 = vld [vmem:[#allocation5 + $0x80] sm:$0xff]  ;;  %v203_v38 = vld [vmem:[#allocation7 + $0xf8] sm:$0xff]  ;;  %v202_v39 = vld [vmem:[#allocation7 + $0xf0] sm:$0xff] }
  0x1a   :  { %135 = vmatpush.msra.mxu0 %v120_v11  ;;  %204 = vmatpush.msra.mxu2 %v203_v38  ;;  %v201_v42 = vld [vmem:[#allocation7 + $0xe8] sm:$0xff]  ;;  %v200_v46 = vld [vmem:[#allocation7 + $0xe0] sm:$0xff]  ;;  %v199_v50 = vld [vmem:[#allocation7 + $0xd8] sm:$0xff] }
  0x1b   :  { %172 = vmatpush.msra.mxu1 %v161_v12  ;;  %v198_v54 = vld [vmem:[#allocation7 + $0xd0] sm:$0xff]  ;;  %v197_v58 = vld [vmem:[#allocation7 + $0xc8] sm:$0xff]  ;;  %v196_v61 = vld [vmem:[#allocation7 + $0xc0] sm:$0xff] }
  0x1c   :  { %136 = vmatpush.msra.mxu0 %v119_v13  ;;  %205 = vmatpush.msra.mxu2 %v202_v39  ;;  %v195_v62 = vld [vmem:[#allocation7 + $0xb8] sm:$0xff]  ;;  %v194_v63 = vld [vmem:[#allocation7 + $0xb0] sm:$0xff]  ;;  %v193_v1 = vld [vmem:[#allocation7 + $0xa8] sm:$0xff] }
  0x1d   :  { %173 = vmatpush.msra.mxu1 %v160_v14  ;;  %v192_v4 = vld [vmem:[#allocation7 + $0xa0] sm:$0xff]  ;;  %v191_v6 = vld [vmem:[#allocation7 + $0x98] sm:$0xff]  ;;  %v190_v10 = vld [vmem:[#allocation7 + $0x90] sm:$0xff] }
  0x1e   :  { %137 = vmatpush.msra.mxu0 %v118_v15  ;;  %206 = vmatpush.msra.mxu2 %v201_v42 }
  0x1f   :  { %174 = vmatpush.msra.mxu1 %v159_v16  ;;  %v189_v16 = vld [vmem:[#allocation7 + $0x88] sm:$0xff] }
  0x20   :  { %138 = vmatpush.msra.mxu0 %v117_v17  ;;  %207 = vmatpush.msra.mxu2 %v200_v46  ;;  %v188_v17 = vld [vmem:[#allocation7 + $0x80] sm:$0xff] }
  0x21   :  { %175 = vmatpush.msra.mxu1 %v158_v18  ;;  %v258_v18 = vld [vmem:[%s424_s3] ss:$0 sm:$0xff] }
  0x22   :  { %139 = vmatpush.msra.mxu0 %v116_v19  ;;  %208 = vmatpush.msra.mxu2 %v199_v50 }
  0x23   :  { %176 = vmatpush.msra.mxu1 %v157_v20 }
  0x24   :  { %140 = vmatpush.msra.mxu0 %v115_v21  ;;  %209 = vmatpush.msra.mxu2 %v198_v54 }
  0x25   :  { %177 = vmatpush.msra.mxu1 %v156_v22 }
  0x26   :  { %141 = vmatpush.msra.mxu0 %v114_v23  ;;  %210 = vmatpush.msra.mxu2 %v197_v58  ;;  %v259_v23 = vld [vmem:[%s424_s3 + $0x1] ss:$0 sm:$0xff] }
  0x27   :  { %178 = vmatpush.msra.mxu1 %v155_v24 }
  0x28   :  { %142 = vmatpush.msra.mxu0 %v113_v25  ;;  %211 = vmatpush.msra.mxu2 %v196_v61 }
  0x29   :  { %179 = vmatpush.msra.mxu1 %v154_v26 }
  0x2a   :  { %143 = vmatpush.msra.mxu0 %v112_v27  ;;  %212 = vmatpush.msra.mxu2 %v195_v62 }
  0x2b   :  { %180 = vmatpush.msra.mxu1 %v153_v28 }
  0x2c   :  { %144 = vmatpush.msra.mxu0 %v111_v29  ;;  %213 = vmatpush.msra.mxu2 %v194_v63 }
  0x2d   :  { %181 = vmatpush.msra.mxu1 %v152_v30 }
  0x2e   :  { %145 = vmatpush.msra.mxu0 %v110_v31  ;;  %214 = vmatpush.msra.mxu2 %v193_v1 }
  0x2f   :  { %182 = vmatpush.msra.mxu1 %v151_v32 }
  0x30   :  { %215 = vmatpush.msra.mxu2 %v192_v4 }
  0x32   :  { %216 = vmatpush.msra.mxu2 %v191_v6 }
  0x34   :  { %217 = vmatpush.msra.mxu2 %v190_v10 }
  0x36   :  { %218 = vmatpush.msra.mxu2 %v189_v16 }
  0x38   :  { %219 = vmatpush.msra.mxu2 %v188_v17 }
  0x82   :  { %v65_v33 = vpop.xlane.xlu0 %64 }
  0x83   :  { %v66_v34 = vadd.f32 1.0, %v65_v33 }
  0x85   :  { %260 = vrsqrt.f32 %v66_v34  ;;  %v77_v45 = vand.u32 2147483648, %v66_v34  ;;  %v103_v48 = vand.u32 2147483647, %v66_v34  ;;  %vm99_vm1 = vweird.f32 %v66_v34 }
  0x86   :  { %262 = vrcp.f32 %v66_v34  ;;  %vm74_vm4 = vcmp.eq.f32.partialorder %v66_v34, inf  ;;  %vm76_vm5 = vcmp.eq.f32.partialorder %v66_v34, 0.0 }
  0x87   :  { %v106_v53 = vor.u32 1.1754944e-38, %v77_v45  ;;  %vm104_vm3 = vcmp.eq.f32.partialorder %v103_v48, 8.507059e+37 }
  0x8b   :  { %v261_v35 = vpop.eup %260 }
  0x8c   :  { %v263_v36 = vpop.eup %262  ;;  %v68_v37 = vmul.f32 %v261_v35, %v66_v34 }
  0x8d   :  { %v95_v40 = vmul.f32 %v263_v36, %v66_v34  ;;  %vm100_vm0 = vweird.f32 %v263_v36 }
  0x8e   :  { %v69_v41 = vmul.f32 %v261_v35, %v68_v37  ;;  %vm101_vm2 = vmor %vm99_vm1, %vm100_vm0 }
  0x8f   :  { %v96_v43 = vsub.f32 1.0, %v95_v40 }
  0x90   :  { %v70_v44 = vmul.f32 0.5, %v69_v41 }
  0x91   :  { %v97_v47 = vmul.f32 %v263_v36, %v96_v43 }
  0x92   :  { %v71_v49 = vsub.f32 1.5, %v70_v44 }
  0x93   :  { %v98_v51 = vadd.f32 %v263_v36, %v97_v47 }
  0x94   :  { %v72_v52 = vmul.f32 %v261_v35, %v71_v49 }
  0x95   :  { %v102_v55 = vsel %vm101_vm2, %v263_v36, %v98_v51 }
  0x96   :  { %v73_v56 = vmul.f32 %v72_v52, %v66_v34  ;;  %v107_v57 = vsel %vm104_vm3, %v106_v53, %v102_v55 }
  0x98   :  { %v75_v59 = vsel %vm74_vm4, %v66_v34, %v73_v56 }
  0x99   :  { %v78_v60 = vsel %vm76_vm5, %v77_v45, %v75_v59 }
  0x9a   :  { %264 = vrcp.f32 %v78_v60  ;;  %v90_v7 = vand.u32 2147483648, %v78_v60  ;;  %v88_v9 = vand.u32 2147483647, %v78_v60  ;;  %vm84_vm7 = vweird.f32 %v78_v60 }
  0x9c   :  { %v91_v12 = vor.u32 1.1754944e-38, %v90_v7  ;;  %vm89_vm9 = vcmp.eq.f32.partialorder %v88_v9, 8.507059e+37 }
  0xa0   :  { %v265_v2 = vpop.eup %264 }
  0xa1   :  { %v80_v3 = vmul.f32 %v265_v2, %v78_v60  ;;  %vm85_vm6 = vweird.f32 %v265_v2 }
  0xa2   :  { %vm86_vm8 = vmor %vm84_vm7, %vm85_vm6 }
  0xa3   :  { %v81_v5 = vsub.f32 1.0, %v80_v3 }
  0xa5   :  { %v82_v8 = vmul.f32 %v265_v2, %v81_v5 }
  0xa7   :  { %v83_v11 = vadd.f32 %v265_v2, %v82_v8 }
  0xa9   :  { %v87_v13 = vsel %vm86_vm8, %v265_v2, %v83_v11 }
  0xaa   :  { %v92_v14 = vsel %vm89_vm9, %v91_v12, %v87_v13 }
  0xab   :  { %v109_v15 = vmul.f32 %v92_v14, %v408_v0 }
  0xad   :  { %146 = vmatmul.f32.vlgmr.msra.gmra.mxu0 %v109_v15  ;;  %183 = vmatmul.f32.vlgmr.msra.gmra.mxu1 %v109_v15 }
 0x12a   :  { %v147_v19 = vpop.f32.mrf.mxu0  ;;  %v184_v0 = vpop.f32.mrf.mxu1 }
 0x12b   :  { %v148_v20 = vadd.f32 %v258_v18, %v147_v19 }
 0x12d   :  { %220 = vmatmul.f32.vlgmr.msra.gmra.mxu2 %v148_v20 }
 0x1b0   :  { %v221_v21 = vpop.f32.mrf.mxu2 }
 0x1b1   :  { %v224_v22 = vmul.f32 %v221_v21, %v107_v57 }
 0x1b3   :  { %v225_v24 = vadd.f32 %v224_v22, %v184_v0 }
 0x1b5   :  { %v231_v25 = vadd.f32 %v259_v23, %v225_v24 }
 0x1b7   :  { %232 = vst [vmem:[#allocation8] sm:$0xff] %v231_v25 }
 0x1b8   :  { %243 = dma.vmem_to_hbm [thread:$0]  %s239_s8, 128, %s241_s11, [#allocation4]  }
 0x1b9   :  { %366 = dma.done.wait [#allocation4], 128  }
 0x1ba   :  { %367 = vsyncadd [#allocation4], 4294967168 }
 0x1bb   :  { %248 = vsyncpa [#allocation3], 1 }
 0x1bc   :  { %249 = vsyncpa [#allocation6], 1 }
 0x1bd   :  { %250 = vsyncpa [#allocation4], 1 }

</bundles_post_ra>
